<compile_context>
chip_gen: v6e
topology: v6e:2x2x1
jax: 0.10.0
libtpu: 0.0.40
codegen_flags: <defaults>
</compile_context>

<pallas_src>
import jax
import jax.numpy as jnp
from jax.experimental import pallas as pl
from jax.experimental.pallas import tpu as pltpu


def _leaky_relu(x, slope=0.01):
    return jnp.where(x > 0, x, slope * x)


def _round_up(n, m):
    return ((n + m - 1) // m) * m


# --------------------------------------------------------------------------
# Kernel
# --------------------------------------------------------------------------
def rnd_dueling_kernel(
    x_ref,    # [TB, I]  stream dtype (f32 or bf16)
    w1_ref,   # [I, H]   stream dtype
    b1_ref,   # [1, H]   f32
    w2_ref,   # [H, H]   stream dtype
    b2_ref,   # [1, H]   f32
    wq_ref,   # [H, O]   stream dtype (folded dueling head)
    bq_ref,   # [1, O]   f32          (folded dueling bias)
    out_ref,  # [TB, O]  stream dtype
):
    cdt = w1_ref.dtype

    # feature layer 0 + leaky_relu (f32 accumulation on the MXU)
    h = jnp.dot(x_ref[...], w1_ref[...], preferred_element_type=jnp.float32)
    h = _leaky_relu(h + b1_ref[...])

    # feature layer 1 + leaky_relu
    h = jnp.dot(h.astype(cdt), w2_ref[...], preferred_element_type=jnp.float32)
    h = _leaky_relu(h + b2_ref[...])

    # folded dueling head: q = V + (A - mean_O(A)) == h @ W_q + b_q
    q = jnp.dot(h.astype(cdt), wq_ref[...], preferred_element_type=jnp.float32)
    q = q + bq_ref[...]

    # sigmoid(q) * 20
    out_ref[...] = (jax.nn.sigmoid(q) * 20.0).astype(out_ref.dtype)


# --------------------------------------------------------------------------
# Host-side parameter prep (run ONCE, outside the per-call forward path)
# --------------------------------------------------------------------------
def fold_dueling_head(params):
    """Fold value/advantage/mean-subtraction into a single [H, O] linear (f32)."""
    wv = params["wv"].astype(jnp.float32)   # [H, 1]
    bv = params["bv"].astype(jnp.float32)   # [1, 1]
    wa = params["wa"].astype(jnp.float32)   # [H, O]
    ba = params["ba"].astype(jnp.float32)   # [1, O]
    n_out = wa.shape[1]
    center = (jnp.eye(n_out, dtype=jnp.float32)
              - jnp.full((n_out, n_out), 1.0 / n_out, dtype=jnp.float32))
    wq = wv @ jnp.ones((1, n_out), jnp.float32) + wa @ center
    bq = bv + (ba - jnp.mean(ba, axis=1, keepdims=True))
    return wq, bq


def prepare_params(params, compute_dtype=jnp.float32):
    """Fold the head and cast weights to the stream/compute dtype once."""
    wq, bq = fold_dueling_head(params)
    prepped = dict(
        w1=params["w1"].astype(compute_dtype),
        b1=params["b1"].astype(jnp.float32),
        w2=params["w2"].astype(compute_dtype),
        b2=params["b2"].astype(jnp.float32),
        wq=wq.astype(compute_dtype),
        bq=bq.astype(jnp.float32),
        compute_dtype=compute_dtype,
    )
    return prepped


# --------------------------------------------------------------------------
# Tiling choice: target 2 grid steps (even for v7x megacore), VMEM-bounded
# --------------------------------------------------------------------------
def _choose_tiling(B, I, H, O, itemsize):
    # Per-batch-row VMEM bytes: double-buffered x/out in stream dtype plus the
    # f32 [TB, H] intermediates the kernel materializes.  Weights are tiny and
    # ignored here.  Budget leaves headroom under v5e's 16 MiB scoped default.
    per_row = 2 * (I + O) * itemsize + 2 * H * 4
    vmem_budget = 12 << 20
    max_tb = max(8, (vmem_budget // per_row) // 8 * 8)

    steps = 2  # even => batch splits across both TCs on v7x; cheap on v5e/v6e
    tb = _round_up(pl.cdiv(B, steps), 8)
    while tb > max_tb:
        steps += 2
        tb = _round_up(pl.cdiv(B, steps), 8)
    padded_b = tb * steps
    return tb, padded_b


# --------------------------------------------------------------------------
# Forward
# --------------------------------------------------------------------------
def rnd_dueling_forward(x, prepped):
    """x: [B, input_size] in f32 or bf16. Returns [B, output_size] in x.dtype."""
    B, I = x.shape
    H = prepped["w1"].shape[1]
    O = prepped["wq"].shape[1]
    cdt = prepped["compute_dtype"]
    x = x.astype(cdt)

    tb, padded_b = _choose_tiling(B, I, H, O, jnp.dtype(cdt).itemsize)
    if padded_b != B:
        x = jnp.pad(x, ((0, padded_b - B), (0, 0)))
    grid = (padded_b // tb,)

    const = lambda i: (0, 0)  # weights/biases: VMEM-resident across grid steps
    grid_spec = pltpu.PrefetchScalarGridSpec(
        num_scalar_prefetch=0,
        grid=grid,
        in_specs=[
            pl.BlockSpec((tb, I), lambda i: (i, 0)),   # x streams tile-by-tile
            pl.BlockSpec((I, H), const),
            pl.BlockSpec((1, H), const),
            pl.BlockSpec((H, H), const),
            pl.BlockSpec((1, H), const),
            pl.BlockSpec((H, O), const),
            pl.BlockSpec((1, O), const),
        ],
        out_specs=pl.BlockSpec((tb, O), lambda i: (i, 0)),
    )

    out = pl.pallas_call(
        rnd_dueling_kernel,
        out_shape=jax.ShapeDtypeStruct((padded_b, O), cdt),
        grid_spec=grid_spec,
        compiler_params=pltpu.CompilerParams(
            dimension_semantics=("parallel",),  # megacore split on v7x
        ),
    )(x, prepped["w1"], prepped["b1"], prepped["w2"], prepped["b2"],
      prepped["wq"], prepped["bq"])
    return out[:B]


# --------------------------------------------------------------------------
# Init + pure-JAX reference
# --------------------------------------------------------------------------
def init_params(key, input_size, hidden_size, output_size):
    """Deterministic synthetic init (PyTorch Linear-like uniform fan-in scaling)."""
    def linear(k, fan_in, fan_out):
        kw, kb = jax.random.split(k)
        bound = 1.0 / jnp.sqrt(fan_in)
        # stored as [in, out] (transpose of torch's [out, in]) for x @ W
        w = jax.random.uniform(kw, (fan_in, fan_out), jnp.float32, -bound, bound)
        b = jax.random.uniform(kb, (1, fan_out), jnp.float32, -bound, bound)
        return w, b

    k1, k2, k3, k4 = jax.random.split(key, 4)
    w1, b1 = linear(k1, input_size, hidden_size)
    w2, b2 = linear(k2, hidden_size, hidden_size)
    wv, bv = linear(k3, hidden_size, 1)
    wa, ba = linear(k4, hidden_size, output_size)
    return dict(w1=w1, b1=b1, w2=w2, b2=b2, wv=wv, bv=bv, wa=wa, ba=ba)


def reference_forward(x, p):
    """Pure-JAX reference mirroring the PyTorch forward (unfolded head, f32)."""
    hi = jax.lax.Precision.HIGHEST
    h = _leaky_relu(jnp.dot(x, p["w1"], precision=hi) + p["b1"])
    h = _leaky_relu(jnp.dot(h, p["w2"], precision=hi) + p["b2"])
    value = jnp.dot(h, p["wv"], precision=hi) + p["bv"]
    adv = jnp.dot(h, p["wa"], precision=hi) + p["ba"]
    q = value + (adv - jnp.mean(adv, axis=1, keepdims=True))
    return jax.nn.sigmoid(q) * 20.0


if __name__ == "__main__":
    key = jax.random.PRNGKey(0)
    k_params, k_x1, k_x2 = jax.random.split(key, 3)

    input_size, hidden_size, output_size = 16, 32, 4
    params = init_params(k_params, input_size, hidden_size, output_size)

    # Parameter prep (head folding + dtype casts) happens ONCE, off the hot path.
    prepped_f32 = prepare_params(params, jnp.float32)
    prepped_bf16 = prepare_params(params, jnp.bfloat16)

    # 1) Small f32 check: tight tolerance vs. the unfolded PyTorch-style reference.
    batch = 8
    x_small = jax.random.normal(k_x1, (batch, input_size), jnp.float32)
    out_small = jax.block_until_ready(rnd_dueling_forward(x_small, prepped_f32))
    ref_small = reference_forward(x_small, params)
    assert out_small.shape == (batch, output_size)
    assert jnp.allclose(out_small, ref_small, atol=1e-4, rtol=1e-5), "f32 mismatch vs reference"

    # 2) Larger bf16 run exercising the 2-step batch grid (tb = 2048 rows,
    #    VMEM-resident weights, v7x megacore split); compared loosely against
    #    the f32 reference.
    big_b = 4096
    x_big = jax.random.normal(k_x2, (big_b, input_size), jnp.float32)
    out_big = jax.block_until_ready(
        rnd_dueling_forward(x_big.astype(jnp.bfloat16), prepped_bf16))
    ref_big = reference_forward(x_big, params)
    assert out_big.shape == (big_b, output_size)
    assert jnp.allclose(out_big.astype(jnp.float32), ref_big, atol=0.5), "bf16 mismatch vs f32 reference"

    print("KERNEL_OK")
</pallas_src>

<mosaic_0001>
module attributes {stable_mosaic.version = 11 : i64} {
  func.func @rnd_dueling_kernel(%arg0: i32, %arg1: memref<8x16xf32, #tpu.memory_space<vmem>>, %arg2: memref<16x32xf32, #tpu.memory_space<vmem>>, %arg3: memref<1x32xf32, #tpu.memory_space<vmem>>, %arg4: memref<32x32xf32, #tpu.memory_space<vmem>>, %arg5: memref<1x32xf32, #tpu.memory_space<vmem>>, %arg6: memref<32x4xf32, #tpu.memory_space<vmem>>, %arg7: memref<1x4xf32, #tpu.memory_space<vmem>>, %arg8: memref<8x4xf32, #tpu.memory_space<vmem>>) attributes {dimension_semantics = [#tpu.dimension_semantics<parallel>], iteration_bounds = array<i64: 2>, scalar_prefetch = 0 : i64, scratch_operands = 0 : i64, tpu.core_type = #tpu.core_type<tc>, window_params = [{transform_indices = @transform_0, window_bounds = array<i64: 8, 16>}, {pipeline_mode = #tpu.pipeline_mode<synchronous>, transform_indices = @transform_1, window_bounds = array<i64: 16, 32>}, {pipeline_mode = #tpu.pipeline_mode<synchronous>, transform_indices = @transform_2, window_bounds = array<i64: 1, 32>}, {pipeline_mode = #tpu.pipeline_mode<synchronous>, transform_indices = @transform_3, window_bounds = array<i64: 32, 32>}, {pipeline_mode = #tpu.pipeline_mode<synchronous>, transform_indices = @transform_4, window_bounds = array<i64: 1, 32>}, {pipeline_mode = #tpu.pipeline_mode<synchronous>, transform_indices = @transform_5, window_bounds = array<i64: 32, 4>}, {pipeline_mode = #tpu.pipeline_mode<synchronous>, transform_indices = @transform_6, window_bounds = array<i64: 1, 4>}, {transform_indices = @transform_7, window_bounds = array<i64: 8, 4>}]} {
    %c0 = arith.constant 0 : index
    %c0_0 = arith.constant 0 : index
    %0 = vector.load %arg1[%c0, %c0_0] : memref<8x16xf32, #tpu.memory_space<vmem>>, vector<8x16xf32>
    %c0_1 = arith.constant 0 : index
    %c0_2 = arith.constant 0 : index
    %1 = vector.load %arg2[%c0_1, %c0_2] : memref<16x32xf32, #tpu.memory_space<vmem>>, vector<16x32xf32>
    %cst = arith.constant dense<0.000000e+00> : vector<8x32xf32>
    %2 = tpu.matmul %0, %1, %cst {dimension_numbers = #tpu.dot_dimension_numbers<[1], [0], [0], [1], [0, 0, 1, 1], [], []>} : vector<8x16xf32>, vector<16x32xf32>, vector<8x32xf32> -> vector<8x32xf32>
    %c0_3 = arith.constant 0 : index
    %c0_4 = arith.constant 0 : index
    %3 = vector.load %arg3[%c0_3, %c0_4] : memref<1x32xf32, #tpu.memory_space<vmem>>, vector<1x32xf32>
    %4 = vector.broadcast %3 : vector<1x32xf32> to vector<8x32xf32>
    %5 = arith.addf %2, %4 : vector<8x32xf32>
    %cst_5 = arith.constant 0.000000e+00 : f32
    %6 = vector.broadcast %cst_5 : f32 to vector<8x32xf32>
    %7 = arith.cmpf ogt, %5, %6 : vector<8x32xf32>
    %cst_6 = arith.constant 0.00999999977 : f32
    %8 = vector.broadcast %cst_6 : f32 to vector<8x32xf32>
    %9 = arith.mulf %8, %5 : vector<8x32xf32>
    %10 = arith.select %7, %5, %9 : vector<8x32xi1>, vector<8x32xf32>
    %c0_7 = arith.constant 0 : index
    %c0_8 = arith.constant 0 : index
    %11 = vector.load %arg4[%c0_7, %c0_8] : memref<32x32xf32, #tpu.memory_space<vmem>>, vector<32x32xf32>
    %cst_9 = arith.constant dense<0.000000e+00> : vector<8x32xf32>
    %12 = tpu.matmul %10, %11, %cst_9 {dimension_numbers = #tpu.dot_dimension_numbers<[1], [0], [0], [1], [0, 0, 1, 1], [], []>} : vector<8x32xf32>, vector<32x32xf32>, vector<8x32xf32> -> vector<8x32xf32>
    %c0_10 = arith.constant 0 : index
    %c0_11 = arith.constant 0 : index
    %13 = vector.load %arg5[%c0_10, %c0_11] : memref<1x32xf32, #tpu.memory_space<vmem>>, vector<1x32xf32>
    %14 = vector.broadcast %13 : vector<1x32xf32> to vector<8x32xf32>
    %15 = arith.addf %12, %14 : vector<8x32xf32>
    %cst_12 = arith.constant 0.000000e+00 : f32
    %16 = vector.broadcast %cst_12 : f32 to vector<8x32xf32>
    %17 = arith.cmpf ogt, %15, %16 : vector<8x32xf32>
    %cst_13 = arith.constant 0.00999999977 : f32
    %18 = vector.broadcast %cst_13 : f32 to vector<8x32xf32>
    %19 = arith.mulf %18, %15 : vector<8x32xf32>
    %20 = arith.select %17, %15, %19 : vector<8x32xi1>, vector<8x32xf32>
    %c0_14 = arith.constant 0 : index
    %c0_15 = arith.constant 0 : index
    %21 = vector.load %arg6[%c0_14, %c0_15] : memref<32x4xf32, #tpu.memory_space<vmem>>, vector<32x4xf32>
    %cst_16 = arith.constant dense<0.000000e+00> : vector<8x4xf32>
    %22 = tpu.matmul %20, %21, %cst_16 {dimension_numbers = #tpu.dot_dimension_numbers<[1], [0], [0], [1], [0, 0, 1, 1], [], []>} : vector<8x32xf32>, vector<32x4xf32>, vector<8x4xf32> -> vector<8x4xf32>
    %c0_17 = arith.constant 0 : index
    %c0_18 = arith.constant 0 : index
    %23 = vector.load %arg7[%c0_17, %c0_18] : memref<1x4xf32, #tpu.memory_space<vmem>>, vector<1x4xf32>
    %24 = vector.broadcast %23 : vector<1x4xf32> to vector<8x4xf32>
    %25 = arith.addf %22, %24 : vector<8x4xf32>
    %26 = arith.negf %25 : vector<8x4xf32>
    %27 = math.exp %26 : vector<8x4xf32>
    %cst_19 = arith.constant 1.000000e+00 : f32
    %28 = vector.broadcast %cst_19 : f32 to vector<8x4xf32>
    %29 = arith.addf %28, %27 : vector<8x4xf32>
    %30 = arith.divf %28, %29 : vector<8x4xf32>
    %cst_20 = arith.constant 2.000000e+01 : f32
    %31 = vector.broadcast %cst_20 : f32 to vector<8x4xf32>
    %32 = arith.mulf %30, %31 : vector<8x4xf32>
    %c0_21 = arith.constant 0 : index
    %c0_22 = arith.constant 0 : index
    %33 = vector.load %arg8[%c0_21, %c0_22] : memref<8x4xf32, #tpu.memory_space<vmem>>, vector<8x4xf32>
    tpu.vector_store %arg8[%c0_21, %c0_22], %32 {strides = array<i32>} : memref<8x4xf32, #tpu.memory_space<vmem>>, vector<8x4xf32>,
    return
  }
  func.func @transform_0(%arg0: i32) -> (i32, i32) {
    %c0_i32 = arith.constant 0 : i32
    %c0_i32_0 = arith.constant 0 : i32
    return %arg0, %c0_i32 : i32, i32
  }
  func.func @transform_1(%arg0: i32) -> (i32, i32) {
    %c0_i32 = arith.constant 0 : i32
    %c0_i32_0 = arith.constant 0 : i32
    %c0_i32_1 = arith.constant 0 : i32
    return %c0_i32, %c0_i32_0 : i32, i32
  }
  func.func @transform_2(%arg0: i32) -> (i32, i32) {
    %c0_i32 = arith.constant 0 : i32
    %c0_i32_0 = arith.constant 0 : i32
    %c0_i32_1 = arith.constant 0 : i32
    return %c0_i32, %c0_i32_0 : i32, i32
  }
  func.func @transform_3(%arg0: i32) -> (i32, i32) {
    %c0_i32 = arith.constant 0 : i32
    %c0_i32_0 = arith.constant 0 : i32
    %c0_i32_1 = arith.constant 0 : i32
    return %c0_i32, %c0_i32_0 : i32, i32
  }
  func.func @transform_4(%arg0: i32) -> (i32, i32) {
    %c0_i32 = arith.constant 0 : i32
    %c0_i32_0 = arith.constant 0 : i32
    %c0_i32_1 = arith.constant 0 : i32
    return %c0_i32, %c0_i32_0 : i32, i32
  }
  func.func @transform_5(%arg0: i32) -> (i32, i32) {
    %c0_i32 = arith.constant 0 : i32
    %c0_i32_0 = arith.constant 0 : i32
    %c0_i32_1 = arith.constant 0 : i32
    return %c0_i32, %c0_i32_0 : i32, i32
  }
  func.func @transform_6(%arg0: i32) -> (i32, i32) {
    %c0_i32 = arith.constant 0 : i32
    %c0_i32_0 = arith.constant 0 : i32
    %c0_i32_1 = arith.constant 0 : i32
    return %c0_i32, %c0_i32_0 : i32, i32
  }
  func.func @transform_7(%arg0: i32) -> (i32, i32) {
    %c0_i32 = arith.constant 0 : i32
    %c0_i32_0 = arith.constant 0 : i32
    return %arg0, %c0_i32 : i32, i32
  }
}

</mosaic_0001>

<bundles_post_ra>
// kernel: tpu_custom_call.1
= control target key start
LH: loop header
LB: loop body
LE: loop exit
PB: predicated region body
PF: predicated region fallthrough
CT: control target
= control target key end

     0   :  { %12 = vsyncpa [#allocation3], 0  ;;  %s1066_s0 = inlined_call_operand.hbm [shape: f32[16,16], index: 0, kind: input, shape index: {}]   ;;  %s1067_s1 = inlined_call_operand.hbm [shape: f32[16,32], index: 1, kind: input, shape index: {}]   ;;  %s1068_s2 = inlined_call_operand.vmem [shape: f32[1,32], index: 2, kind: input, shape index: {}]   ;;  %s1069_s3 = inlined_call_operand.vmem [shape: f32[32,32], index: 3, kind: input, shape index: {}]   ;;  %s1070_s4 = inlined_call_operand.vmem [shape: f32[1,32], index: 4, kind: input, shape index: {}]   ;;  %s1071_s5 = inlined_call_operand.vmem [shape: f32[32,4], index: 5, kind: input, shape index: {}]   ;;  %s1072_s6 = inlined_call_operand.vmem [shape: f32[1,4], index: 6, kind: input, shape index: {}]   ;;  %s1073_s7 = inlined_call_operand.vmem [shape: f32[16,4], index: 7, kind: output, shape index: {}]  }
   0x1   :  { %14 = vsyncpa [#allocation3 + $0x1], 0 }
   0x2   :  { %15 = vsyncpa [#allocation5], 0  ;;  %s911_s24 = smov 0   ;;  %s913_s25 = smov 0  }
   0x3   :  { %s915_s26 = smov 0   ;;  %s917_s27 = smov 0  }
   0x4 LB: > { %s930_s28 = sadd.s32 4294967295, %s863_s27   ;;  %p41_p0 = scmp.ne.s32.totalorder %s855_s25, %s851_s24  ;;  %s863_s27 = sphi %s917_s27, %s1088_s27   ;;  %s859_s26 = sphi %s915_s26, %s1087_s26   ;;  %s855_s25 = sphi %s913_s25, %s1086_s25   ;;  %s851_s24 = sphi %s911_s24, %s1085_s24  }
   0x5   : > { %p1074_p1 = scmp.eq.s32.totalorder %s930_s28, 0  ;;  %p653_p2 = scmp.ge.s32.totalorder %s863_s27, 1 }
   0x6   : > { %p204_p3 = scmp.lt.s32.totalorder %s863_s27, 3  ;;  %s865_s8 = smov [#allocation4]  }
   0x7   : > { %p938_p4 = por %p1074_p1, %p41_p0  ;;  %s216_s9 = sshll.u32 %s865_s8, 4  ;;  %s217_s9 = int_to_ptr.vmem [resolvable:$true] %s216_s9 }
   0x8   : > { %p942_p5 = pnand %p653_p2, %p204_p3  ;;  %s955_s11 = sadd.s32 1, %s863_s27  }
   0x9   : > { %s1077_s29 = scalar_select %p938_p4, 1, 0 }
   0xa   : > { %s1078_s30 = scalar_select %p942_p5, 1, 0 }
   0xb   : > { %p719_p6 = pneg %p942_p5  ;;  %s28_s12 = sadd.s32 1, %s859_s26 }
   0xc   : > { %s25_s13 = ssub.s32 %s863_s27, %s955_s11  ;;  %s782_s14 = scalar_lea.vmem %s217_s9, 256 }
   0xd   : > { %p950_p7 = pnand %p719_p6, %p1074_p1  ;;  %p783_p9 = scmp.ne.s32.totalorder %s217_s9, %s782_s14 }
   0xe   : > { %p790_p12 = scmp.lt.s32.totalorder %s217_s9, %s217_s9  ;;  %p791_p13 = scmp.lt.s32.totalorder %s782_s14, %s782_s14 }
   0xf   : > { %p773_p8 = pneg %p950_p7 }
  0x10   : > { %p792_p0 = por %p791_p13, %p790_p12 }
  0x11   : > { %p785_p10 = pnand %p783_p9, %p773_p8 }
  0x13   : > { %p786_p11 = pneg %p785_p10 }
  0x15   : > { %p793_p2 = pnand %p792_p0, %p786_p11 }
  0x17   : > { %796 = shalt.err (!%p793_p2)
}
  0x18   : > { %s866_s15 = smov 128   ;;  %s867_s16 = smov 8  }
  0x19   : > { %722 = dma.hbm_to_vmem [thread:$0]  (!%p950_p7), %s1067_s1, 256, %s217_s9, [#allocation5], %s866_s15, %s866_s15, %s867_s16  }
  0x1a   : > { %p26_p3 = scmp.eq.s32.totalorder %s25_s13, 0  ;;  %p35_p6 = scmp.ne.s32.totalorder %s859_s26, %s855_s25 }
  0x1b   : > { %p36_p8 = scmp.eq.s32.totalorder %s863_s27, 0  ;;  %p728_p9 = scmp.lt.s32.totalorder %s863_s27, 2 }
  0x1c   : > { %s972_s19 = scalar_select %p26_p3, %s859_s26, %s28_s12  }
  0x1d   : > { %p37_p10 = por %p36_p8, %p35_p6  ;;  %s245_s20 = sand.u32 1, %s859_s26  }
  0x1e   : > { %s656_s21 = sshll.u32 %s245_s20, 3  ;;  %s657_s22 = sshll.u32 %s863_s27, 7 }
  0x1f   : > { %s979_s8 = scalar_lea.hbm %s1066_s0, %s657_s22  ;;  %s249_s10 = scalar_lea.vmem [#allocation2], %s656_s21 }
  0x20   : > { %s256_s9 = sshll.u32 %s249_s10, 4  ;;  %p981_p7 = pnand %p728_p9, %p37_p10  ;;  %s257_s9 = int_to_ptr.vmem [resolvable:$true] %s256_s9 }
  0x21   : > { %s246_s12 = scalar_lea.sflag [#allocation3], %s245_s20  ;;  %s797_s14 = scalar_lea.hbm %s979_s8, 128 }
  0x22   : > { %p798_p11 = scmp.ne.s32.totalorder %s979_s8, %s797_s14  ;;  %p799_p12 = pneg %p981_p7 }
  0x23   : > { %s802_s16 = scalar_lea.hbm %s1066_s0, 256  ;;  %p803_p2 = scmp.lt.s32.totalorder %s979_s8, %s1066_s0 }
  0x24   : > { %p800_p13 = pnand %p799_p12, %p798_p11  ;;  %p804_p3 = scmp.lt.s32.totalorder %s802_s16, %s797_s14 }
  0x26   : > { %p801_p0 = pneg %p800_p13  ;;  %p805_p6 = por %p804_p3, %p803_p2 }
  0x28   : > { %p806_p8 = pnand %p805_p6, %p801_p0 }
  0x2a   : > { %809 = shalt.err (!%p806_p8)
}
  0x2b   : > { %s810_s21 = scalar_lea.vmem %s257_s9, 128  ;;  %s868_s20 = smov [#allocation2]  }
  0x2c   : > { %p811_p9 = scmp.ne.s32.totalorder %s257_s9, %s810_s21  ;;  %s815_s22 = sshll.u32 %s868_s20, 4  ;;  %s816_s22 = int_to_ptr.vmem [resolvable:$false] %s815_s22 }
  0x2d   : > { %s817_s23 = scalar_lea.vmem %s816_s22, 256  ;;  %p818_p11 = scmp.lt.s32.totalorder %s257_s9, %s816_s22 }
  0x2e   : > { %p813_p10 = pnand %p811_p9, %p799_p12  ;;  %p819_p13 = scmp.lt.s32.totalorder %s817_s23, %s810_s21 }
  0x30   : > { %p814_p1 = pneg %p813_p10  ;;  %p820_p4 = por %p819_p13, %p818_p11 }
  0x32   : > { %p821_p5 = pnand %p820_p4, %p814_p1 }
  0x34   : > { %824 = shalt.err (!%p821_p5)
}
  0x35   : > { %726 = dma.hbm_to_vmem [thread:$0]  (!%p981_p7), %s979_s8, 128, %s257_s9, %s246_s12  }
  0x36   : > { %p1081_p0 = scmp.ne.s32.totalorder %s1078_s30, 0 }
  0x37   : > { %s267_s24 = sand.u32 (!%p1081_p0), 1, %s855_s25   ;;  %p1082_p12 = scmp.ne.s32.totalorder (!%p1081_p0), %s1077_s29, 0 }
  0x38   : > { %265 = sbr.rel (%p1081_p0) target bundleno = 697 (0x2b9), region = 48  ;;  %s659_s10 = sshll.u32 (!%p1081_p0), %s267_s24, 3 }
  0x39   : > { %s268_s14 = scalar_lea.sflag (!%p1081_p0), [#allocation3], %s267_s24  ;;  %s271_s27 = scalar_lea.vmem (!%p1081_p0), [#allocation2], %s659_s10 }
  0x3d   : > { %842 = dma.done.wait (%p1082_p12), %s268_s14, 128  }
  0x3e   : > { %844 = vsyncadd (%p1082_p12), %s268_s14, 4294967168  ;;  %p1083_p1 = scmp.eq.s32.totalorder %s930_s28, 0 }
  0x40   : > { %846 = dma.done.wait (%p1083_p1), [#allocation5], 256   ;;  %p1084_p4 = pmov %p1083_p1 }
  0x41   : > { %v869_v0 = vmov 0.0   ;;  %vm870_vm0 = vmmov 0   ;;  %v311_v1 = vld [vmem:[#allocation4 + $0x8] sm:$0xff]  ;;  %v310_v2 = vld [vmem:[#allocation4] sm:$0xff]  ;;  %v309_v3 = vld [vmem:[%s271_s27] sm:$0xff]  ;;  %vm319_vm1 = vcmask 130048  }
  0x42   : > { %848 = vsyncadd (%p1084_p4), [#allocation5], 4294967040  ;;  %684 = vmatprep.subr.mxu0 %v869_v0  ;;  %688 = vmatprep.mubr.msk.f32.mxu0 %vm870_vm0, %v869_v0  ;;  %v399_v4 = vld [vmem:[%s1069_s3 + $0x18] sm:$0xff]  ;;  %v398_v5 = vld [vmem:[%s1069_s3 + $0x10] sm:$0xff]  ;;  %vm407_vm3 = vcmask 261120   ;;  %p305_p5 = scmp.lt.s32.totalorder %s930_s28, 1 }
  0x43   : > { %691 = vmatprep.subr.mxu1 %v869_v0  ;;  %699 = vmatprep.mubr.msk.f32.mxu1 %vm870_vm0, %v869_v0  ;;  %v397_v6 = vld [vmem:[%s1069_s3 + $0x8] sm:$0xff]  ;;  %v396_v7 = vld [vmem:[%s1069_s3] sm:$0xff]  ;;  %v487_v8 = vld [vmem:[%s1071_s5 + $0x18] sm:$0xff]  ;;  %vm575_vm5 = vcmask 31744  }
  0x44   : > { %685 = vmatpush3.msra.mxu0 %v311_v1  ;;  %692 = vmatpush3.msra.mxu1 %v399_v4  ;;  %v662_v9 = vld [vmem:[%s1068_s2] ss:$0 sm:$0xff]  ;;  %v486_v15 = vld [vmem:[%s1071_s5 + $0x10] sm:$0xff]  ;;  %v485_v16 = vld [vmem:[%s1071_s5 + $0x8] sm:$0xff]  ;;  %s1090_s28 = smov (!%p305_p5, %s930_s28), 1 }
  0x45   : > { %686 = vmatprep.subr.mxu0 %v869_v0  ;;  %693 = vmatprep.subr.mxu1 %v869_v0  ;;  %v484_v17 = vld [vmem:[%s1071_s5] sm:$0xff]  ;;  %s661_s13 = sshll.u32 %s1090_s28, 3 }
  0x46   : > { %687 = vmatpush3.msra.mxu0 %v310_v2  ;;  %694 = vmatpush3.msra.mxu1 %v398_v5  ;;  %v664_v18 = vld [vmem:[%s1070_s4] ss:$0 sm:$0xff]  ;;  %s308_s16 = scalar_lea.vmem %s1073_s7, %s661_s13 }
  0x47   : > { %689 = vmatmul.mubr.msk.f32.vlgmr.msra.gmra.mxu0 %vm319_vm1, %v309_v3  ;;  %702 = vmatprep.subr.mxu0 %v869_v0  ;;  %v666_v24 = vld [vmem:[%s1072_s6] ss:$0 sm:$0xff] }
  0x48   : > { %710 = vmatprep.mubr.msk.f32.mxu0 %vm870_vm0, %v869_v0  ;;  %695 = vmatprep.subr.mxu1 %v869_v0 }
  0x49   : > { %696 = vmatpush3.msra.mxu1 %v397_v6  ;;  %703 = vmatpush3.msra.mxu0 %v487_v8 }
  0x4a   : > { %697 = vmatprep.subr.mxu1 %v869_v0  ;;  %704 = vmatprep.subr.mxu0 %v869_v0 }
  0x4b   : > { %698 = vmatpush3.msra.mxu1 %v396_v7  ;;  %705 = vmatpush3.msra.mxu0 %v486_v15 }
  0x4c   : > { %706 = vmatprep.subr.mxu0 %v869_v0 }
  0x4d   : > { %707 = vmatpush3.msra.mxu0 %v485_v16 }
  0x4e   : > { %708 = vmatprep.subr.mxu0 %v869_v0 }
  0x4f   : > { %709 = vmatpush3.msra.mxu0 %v484_v17 }
 0x107   : > { %v389_v10 = vpop.f32.mrf.mxu0 }
 0x108   : > { %v390_v11 = vadd.f32 %v662_v9, %v389_v10 }
 0x109   : > { %v690_v12 = vpop.f32.mrf.mxu0 }
 0x10a   : > { %vm393_vm2 = vcmp.gt.f32.partialorder %v390_v11, 0.0  ;;  %v394_v13 = vmul.f32 0.01, %v390_v11 }
 0x10c   : > { %v395_v14 = vsel %vm393_vm2, %v390_v11, %v394_v13 }
 0x10d   : > { %700 = vmatmul.mubr.msk.f32.vlgmr.msra.gmra.mxu1 %vm407_vm3, %v395_v14 }
 0x1cd   : > { %v477_v19 = vpop.f32.mrf.mxu1 }
 0x1ce   : > { %v478_v20 = vadd.f32 %v664_v18, %v477_v19 }
 0x1cf   : > { %v701_v21 = vpop.f32.mrf.mxu1 }
 0x1d0   : > { %vm481_vm4 = vcmp.gt.f32.partialorder %v478_v20, 0.0  ;;  %v482_v22 = vmul.f32 0.01, %v478_v20 }
 0x1d2   : > { %v483_v23 = vsel %vm481_vm4, %v478_v20, %v482_v22 }
 0x1d3   : > { %711 = vmatmul.mubr.msk.f32.vlgmr.msra.gmra.mxu0 %vm407_vm3, %v483_v23 }
 0x293   : > { %v564_v25 = vpop.f32.mrf.mxu0 }
 0x294   : > { %v565_v26 = vadd.f32 %v666_v24, %v564_v25 }
 0x295   : > { %v712_v27 = vpop.f32.mrf.mxu0 }
 0x296   : > { %v668_v28 = vmul.f32 -1.442695, %v565_v26 }
 0x298   : > { %767 = vpow2.f32 %v668_v28 }
 0x2a5   : > { %v768_v29 = vpop.eup %767 }
 0x2a6   : > { %v571_v30 = vadd.f32 1.0, %v768_v29 }
 0x2a8   : > { %769 = vrcp.f32 %v571_v30 }
 0x2b5   : > { %v770_v31 = vpop.eup %769 }
 0x2b6   : > { %v574_v32 = vmul.f32 20.0, %v770_v31 }
 0x2b8   : > { %576 = vst.msk [vmem:[%s308_s16] sm:$0xff] %vm575_vm5, %v574_v32 }
 0x2b9 PF: > { %p18_p7 = scmp.ge.s32.totalorder %s955_s11, 4   ;;  %s1085_s24 = smov %s855_s25 }
 0x2ba   : > { %s1086_s25 = smov %s859_s26  ;;  %s1087_s26 = smov %s972_s19 }
 0x2bb   : > { %s1088_s27 = smov %s955_s11  ;;  %20 = sbr.rel (!%p18_p7) target bundleno = 4 (0x4), region = 92 }
 0x2c0   :  { %596 = vsyncpa [#allocation3], 1 }
 0x2c1   :  { %598 = vsyncpa [#allocation3 + $0x1], 1 }
 0x2c2   :  { %599 = vsyncpa [#allocation5], 1 }

</bundles_post_ra>
